<compile_context>
chip_gen: v5e
topology: v5e:2x2
jax: 0.10.0
libtpu: 0.0.40
codegen_flags: <defaults>
</compile_context>

<pallas_src>
import jax
import jax.numpy as jnp
from jax.experimental import pallas as pl
from jax.experimental.pallas import tpu as pltpu


def single_attention_kernel(x_ref, h_ref, c_ref, att_ref, mask_ref,
                            w_att_ref, b_att_ref,
                            w_gx_ref, w_gc_ref, w_gh_ref, b_g_ref,
                            h_out_ref, c_out_ref):
    x = x_ref[...]          # (B, I)
    h = h_ref[...]          # (B, H)
    c = c_ref[...]          # (B, H)
    att = att_ref[...]      # (S, B, H)

    # ---- Luong attention --------------------------------------------------
    # key = query @ W^T + b   (query == h0)
    key = (jnp.dot(h, w_att_ref[...], preferred_element_type=jnp.float32)
           + b_att_ref[...])                                     # (B, H)

    # scores[s, b] = <attended[s, b, :], key[b, :]>  (lane reduction, keepdims)
    scores = jnp.sum(att * key, axis=-1, keepdims=True)          # (S, B, 1)
    scores = scores + mask_ref[...]                              # -1e30 on padding

    # softmax over the sequence axis (leading dim)
    m = jnp.max(scores, axis=0, keepdims=True)                   # (1, B, 1)
    e = jnp.exp(scores - m)                                      # (S, B, 1)
    denom = jnp.sum(e, axis=0, keepdims=True)                    # (1, B, 1)
    align = e / denom                                            # (S, B, 1)

    # context[b, :] = sum_s align[s, b] * attended[s, b, :]
    context = jnp.sum(align * att, axis=0)                       # (B, H)

    # ---- LSTM cell (input = cat(x, context), one time step) ----------------
    gates = (jnp.dot(x, w_gx_ref[...], preferred_element_type=jnp.float32)
             + jnp.dot(context, w_gc_ref[...], preferred_element_type=jnp.float32)
             + jnp.dot(h, w_gh_ref[...], preferred_element_type=jnp.float32)
             + b_g_ref[...])                                     # (B, 4H) i,f,g,o

    H = h.shape[1]
    i_g = jax.nn.sigmoid(gates[:, 0 * H:1 * H])
    f_g = jax.nn.sigmoid(gates[:, 1 * H:2 * H])
    g_g = jnp.tanh(gates[:, 2 * H:3 * H])
    o_g = jax.nn.sigmoid(gates[:, 3 * H:4 * H])

    c_new = f_g * c + i_g * g_g
    h_new = o_g * jnp.tanh(c_new)

    h_out_ref[...] = h_new.astype(h_out_ref.dtype)
    c_out_ref[...] = c_new.astype(c_out_ref.dtype)


@jax.jit
def single_attention_forward(input_, hidden, attended_args, params):
    """JAX/Pallas equivalent of SingleAttention.forward.

    input_:   (B, input_size) f32
    hidden:   (h0, c0), each (1, B, hidden_size)
    attended_args: (attended (S, B, hidden_size), sequence_lengths (B,) int)
    params:   dict from init_single_attention_params (pre-transposed/fused).
    returns:  (h1, c1), each (1, B, hidden_size)
    """
    attended, sequence_lengths = attended_args
    h0, c0 = hidden
    B, _ = input_.shape
    H = h0.shape[-1]
    S = attended.shape[0]

    # Tiny per-call glue: additive softmax mask built from sequence_lengths.
    mask_bias = jnp.where(
        jnp.arange(S, dtype=jnp.int32)[:, None, None]
        < sequence_lengths.astype(jnp.int32)[None, :, None],
        jnp.float32(0.0), jnp.float32(-1e30))                    # (S, B, 1)

    vmem = pl.BlockSpec(memory_space=pltpu.MemorySpace.VMEM)
    h1, c1 = pl.pallas_call(
        single_attention_kernel,
        out_shape=(jax.ShapeDtypeStruct((B, H), jnp.float32),
                   jax.ShapeDtypeStruct((B, H), jnp.float32)),
        in_specs=[vmem] * 11,
        out_specs=(vmem, vmem),
    )(input_.astype(jnp.float32),
      h0.reshape(B, H).astype(jnp.float32),
      c0.reshape(B, H).astype(jnp.float32),
      attended.astype(jnp.float32),
      mask_bias,
      params["w_att_t"], params["b_att"],
      params["w_gx"], params["w_gc"], params["w_gh"], params["b_g"])

    return h1.reshape(1, B, H), c1.reshape(1, B, H)


def init_single_attention_params(key, input_size, hidden_size):
    """Matches SingleAttention.__init__ and pre-bakes kernel-friendly layouts.

    Attention linear: xavier_normal weight, zero bias.
    LSTM(input_size + hidden_size, hidden_size): PyTorch default U(-k, k), k=1/sqrt(H).
    All transposes / W_ih split / bias fold are done ONCE here (hoisted out of
    the forward path per the performance review).
    """
    I, H = input_size, hidden_size
    k_att, k_ih, k_hh, k_bih, k_bhh = jax.random.split(key, 5)

    std = (2.0 / (H + H)) ** 0.5
    w_att = std * jax.random.normal(k_att, (H, H), dtype=jnp.float32)
    b_att = jnp.zeros((1, H), jnp.float32)

    bound = 1.0 / (H ** 0.5)
    w_ih = jax.random.uniform(k_ih, (4 * H, I + H), jnp.float32, -bound, bound)
    w_hh = jax.random.uniform(k_hh, (4 * H, H), jnp.float32, -bound, bound)
    b_ih = jax.random.uniform(k_bih, (4 * H,), jnp.float32, -bound, bound)
    b_hh = jax.random.uniform(k_bhh, (4 * H,), jnp.float32, -bound, bound)

    return {
        "w_att_t": jnp.asarray(w_att.T),                 # (H, H)
        "b_att":   b_att,                                # (1, H)
        "w_gx":    jnp.asarray(w_ih[:, :I].T),           # (I, 4H)  input_ part of W_ih
        "w_gc":    jnp.asarray(w_ih[:, I:].T),           # (H, 4H)  context part of W_ih
        "w_gh":    jnp.asarray(w_hh.T),                  # (H, 4H)
        "b_g":     (b_ih + b_hh).reshape(1, 4 * H),      # (1, 4H)  fused bias
    }


def reference_forward(input_, hidden, attended_args, params):
    """Pure-JAX reference of the same forward (for correctness check)."""
    attended, sequence_lengths = attended_args
    h0, c0 = hidden
    B, _ = input_.shape
    H = h0.shape[-1]
    S = attended.shape[0]
    hp = jax.lax.Precision.HIGHEST

    h = h0.reshape(B, H)
    c = c0.reshape(B, H)
    key = jnp.dot(h, params["w_att_t"], precision=hp) + params["b_att"]       # (B,H)
    scores = jnp.einsum("sbh,bh->bs", attended, key, precision=hp)            # (B,S)
    mask = jnp.arange(S)[None, :] < sequence_lengths[:, None]
    scores = jnp.where(mask, scores, -1e30)
    align = jax.nn.softmax(scores, axis=1)                                    # (B,S)
    context = jnp.einsum("bs,sbh->bh", align, attended, precision=hp)         # (B,H)

    gates = (jnp.dot(input_, params["w_gx"], precision=hp)
             + jnp.dot(context, params["w_gc"], precision=hp)
             + jnp.dot(h, params["w_gh"], precision=hp)
             + params["b_g"])
    i = jax.nn.sigmoid(gates[:, 0 * H:1 * H])
    f = jax.nn.sigmoid(gates[:, 1 * H:2 * H])
    g = jnp.tanh(gates[:, 2 * H:3 * H])
    o = jax.nn.sigmoid(gates[:, 3 * H:4 * H])
    c1 = f * c + i * g
    h1 = o * jnp.tanh(c1)
    return h1.reshape(1, B, H), c1.reshape(1, B, H)


if __name__ == "__main__":
    B, INPUT, HIDDEN, SEQ = 2, 16, 32, 8

    key = jax.random.PRNGKey(0)
    k_p, k_x, k_h, k_c, k_a = jax.random.split(key, 5)

    params = init_single_attention_params(k_p, INPUT, HIDDEN)
    x = jax.random.normal(k_x, (B, INPUT), dtype=jnp.float32)
    h0 = jax.random.normal(k_h, (1, B, HIDDEN), dtype=jnp.float32)
    c0 = jax.random.normal(k_c, (1, B, HIDDEN), dtype=jnp.float32)
    attended = jax.random.normal(k_a, (SEQ, B, HIDDEN), dtype=jnp.float32)
    sequence_lengths = jnp.array([SEQ, 5], dtype=jnp.int32)

    h1, c1 = single_attention_forward(x, (h0, c0), (attended, sequence_lengths), params)
    jax.block_until_ready((h1, c1))
    assert h1.shape == (1, B, HIDDEN) and c1.shape == (1, B, HIDDEN)

    h_ref, c_ref = reference_forward(x, (h0, c0), (attended, sequence_lengths), params)
    assert bool(jnp.allclose(h1, h_ref, atol=1e-3, rtol=1e-3)), "h mismatch vs reference"
    assert bool(jnp.allclose(c1, c_ref, atol=1e-3, rtol=1e-3)), "c mismatch vs reference"

    print("KERNEL_OK")
</pallas_src>

<mosaic_0001>
module attributes {stable_mosaic.version = 11 : i64} {
  func.func @single_attention_kernel(%arg0: memref<2x16xf32, #tpu.memory_space<vmem>>, %arg1: memref<2x32xf32, #tpu.memory_space<vmem>>, %arg2: memref<2x32xf32, #tpu.memory_space<vmem>>, %arg3: memref<8x2x32xf32, #tpu.memory_space<vmem>>, %arg4: memref<8x2x1xf32, #tpu.memory_space<vmem>>, %arg5: memref<32x32xf32, #tpu.memory_space<vmem>>, %arg6: memref<1x32xf32, #tpu.memory_space<vmem>>, %arg7: memref<16x128xf32, #tpu.memory_space<vmem>>, %arg8: memref<32x128xf32, #tpu.memory_space<vmem>>, %arg9: memref<32x128xf32, #tpu.memory_space<vmem>>, %arg10: memref<1x128xf32, #tpu.memory_space<vmem>>, %arg11: memref<2x32xf32, #tpu.memory_space<vmem>>, %arg12: memref<2x32xf32, #tpu.memory_space<vmem>>) attributes {dimension_semantics = [], scalar_prefetch = 0 : i64, scratch_operands = 0 : i64, tpu.core_type = #tpu.core_type<tc>} {
    %c0 = arith.constant 0 : index
    %c0_0 = arith.constant 0 : index
    %0 = vector.load %arg0[%c0, %c0_0] : memref<2x16xf32, #tpu.memory_space<vmem>>, vector<2x16xf32>
    %c0_1 = arith.constant 0 : index
    %c0_2 = arith.constant 0 : index
    %1 = vector.load %arg1[%c0_1, %c0_2] : memref<2x32xf32, #tpu.memory_space<vmem>>, vector<2x32xf32>
    %c0_3 = arith.constant 0 : index
    %c0_4 = arith.constant 0 : index
    %2 = vector.load %arg2[%c0_3, %c0_4] : memref<2x32xf32, #tpu.memory_space<vmem>>, vector<2x32xf32>
    %c0_5 = arith.constant 0 : index
    %c0_6 = arith.constant 0 : index
    %c0_7 = arith.constant 0 : index
    %3 = vector.load %arg3[%c0_5, %c0_6, %c0_7] : memref<8x2x32xf32, #tpu.memory_space<vmem>>, vector<8x2x32xf32>
    %c0_8 = arith.constant 0 : index
    %c0_9 = arith.constant 0 : index
    %4 = vector.load %arg5[%c0_8, %c0_9] : memref<32x32xf32, #tpu.memory_space<vmem>>, vector<32x32xf32>
    %cst = arith.constant dense<0.000000e+00> : vector<2x32xf32>
    %5 = tpu.matmul %1, %4, %cst {dimension_numbers = #tpu.dot_dimension_numbers<[1], [0], [0], [1], [0, 0, 1, 1], [], []>} : vector<2x32xf32>, vector<32x32xf32>, vector<2x32xf32> -> vector<2x32xf32>
    %c0_10 = arith.constant 0 : index
    %c0_11 = arith.constant 0 : index
    %6 = vector.load %arg6[%c0_10, %c0_11] : memref<1x32xf32, #tpu.memory_space<vmem>>, vector<1x32xf32>
    %7 = vector.broadcast %6 : vector<1x32xf32> to vector<2x32xf32>
    %8 = arith.addf %5, %7 : vector<2x32xf32>
    %9 = vector.shape_cast %8 : vector<2x32xf32> to vector<1x2x32xf32>
    %10 = vector.broadcast %9 : vector<1x2x32xf32> to vector<8x2x32xf32>
    %11 = arith.mulf %3, %10 : vector<8x2x32xf32>
    %cst_12 = arith.constant dense<0.000000e+00> : vector<8x2xf32>
    %12 = vector.multi_reduction <add>, %11, %cst_12 [2] : vector<8x2x32xf32> to vector<8x2xf32>
    %13 = vector.shape_cast %12 : vector<8x2xf32> to vector<8x2x1xf32>
    %c0_13 = arith.constant 0 : index
    %c0_14 = arith.constant 0 : index
    %c0_15 = arith.constant 0 : index
    %14 = vector.load %arg4[%c0_13, %c0_14, %c0_15] : memref<8x2x1xf32, #tpu.memory_space<vmem>>, vector<8x2x1xf32>
    %15 = arith.addf %13, %14 : vector<8x2x1xf32>
    %cst_16 = arith.constant dense<0xFF800000> : vector<2x1xf32>
    %16 = vector.multi_reduction <maximumf>, %15, %cst_16 [0] : vector<8x2x1xf32> to vector<2x1xf32>
    %17 = vector.shape_cast %16 : vector<2x1xf32> to vector<1x2x1xf32>
    %18 = vector.broadcast %17 : vector<1x2x1xf32> to vector<8x2x1xf32>
    %19 = arith.subf %15, %18 : vector<8x2x1xf32>
    %20 = math.exp %19 : vector<8x2x1xf32>
    %cst_17 = arith.constant dense<0.000000e+00> : vector<2x1xf32>
    %21 = vector.multi_reduction <add>, %20, %cst_17 [0] : vector<8x2x1xf32> to vector<2x1xf32>
    %22 = vector.shape_cast %21 : vector<2x1xf32> to vector<1x2x1xf32>
    %23 = vector.broadcast %22 : vector<1x2x1xf32> to vector<8x2x1xf32>
    %24 = arith.divf %20, %23 : vector<8x2x1xf32>
    %25 = vector.broadcast %24 : vector<8x2x1xf32> to vector<8x2x32xf32>
    %26 = arith.mulf %25, %3 : vector<8x2x32xf32>
    %cst_18 = arith.constant dense<0.000000e+00> : vector<2x32xf32>
    %27 = vector.multi_reduction <add>, %26, %cst_18 [0] : vector<8x2x32xf32> to vector<2x32xf32>
    %c0_19 = arith.constant 0 : index
    %c0_20 = arith.constant 0 : index
    %28 = vector.load %arg7[%c0_19, %c0_20] : memref<16x128xf32, #tpu.memory_space<vmem>>, vector<16x128xf32>
    %cst_21 = arith.constant dense<0.000000e+00> : vector<2x128xf32>
    %29 = tpu.matmul %0, %28, %cst_21 {dimension_numbers = #tpu.dot_dimension_numbers<[1], [0], [0], [1], [0, 0, 1, 1], [], []>} : vector<2x16xf32>, vector<16x128xf32>, vector<2x128xf32> -> vector<2x128xf32>
    %c0_22 = arith.constant 0 : index
    %c0_23 = arith.constant 0 : index
    %30 = vector.load %arg8[%c0_22, %c0_23] : memref<32x128xf32, #tpu.memory_space<vmem>>, vector<32x128xf32>
    %cst_24 = arith.constant dense<0.000000e+00> : vector<2x128xf32>
    %31 = tpu.matmul %27, %30, %cst_24 {dimension_numbers = #tpu.dot_dimension_numbers<[1], [0], [0], [1], [0, 0, 1, 1], [], []>} : vector<2x32xf32>, vector<32x128xf32>, vector<2x128xf32> -> vector<2x128xf32>
    %32 = arith.addf %29, %31 : vector<2x128xf32>
    %c0_25 = arith.constant 0 : index
    %c0_26 = arith.constant 0 : index
    %33 = vector.load %arg9[%c0_25, %c0_26] : memref<32x128xf32, #tpu.memory_space<vmem>>, vector<32x128xf32>
    %cst_27 = arith.constant dense<0.000000e+00> : vector<2x128xf32>
    %34 = tpu.matmul %1, %33, %cst_27 {dimension_numbers = #tpu.dot_dimension_numbers<[1], [0], [0], [1], [0, 0, 1, 1], [], []>} : vector<2x32xf32>, vector<32x128xf32>, vector<2x128xf32> -> vector<2x128xf32>
    %35 = arith.addf %32, %34 : vector<2x128xf32>
    %c0_28 = arith.constant 0 : index
    %c0_29 = arith.constant 0 : index
    %36 = vector.load %arg10[%c0_28, %c0_29] : memref<1x128xf32, #tpu.memory_space<vmem>>, vector<1x128xf32>
    %37 = vector.broadcast %36 : vector<1x128xf32> to vector<2x128xf32>
    %38 = arith.addf %35, %37 : vector<2x128xf32>
    %39 = vector.extract_strided_slice %38 {offsets = [0, 0], sizes = [2, 32], strides = [1, 1]} : vector<2x128xf32> to vector<2x32xf32>
    %40 = arith.negf %39 : vector<2x32xf32>
    %41 = math.exp %40 : vector<2x32xf32>
    %cst_30 = arith.constant 1.000000e+00 : f32
    %42 = vector.broadcast %cst_30 : f32 to vector<2x32xf32>
    %43 = arith.addf %42, %41 : vector<2x32xf32>
    %44 = arith.divf %42, %43 : vector<2x32xf32>
    %45 = vector.extract_strided_slice %38 {offsets = [0, 32], sizes = [2, 32], strides = [1, 1]} : vector<2x128xf32> to vector<2x32xf32>
    %46 = arith.negf %45 : vector<2x32xf32>
    %47 = math.exp %46 : vector<2x32xf32>
    %cst_31 = arith.constant 1.000000e+00 : f32
    %48 = vector.broadcast %cst_31 : f32 to vector<2x32xf32>
    %49 = arith.addf %48, %47 : vector<2x32xf32>
    %50 = arith.divf %48, %49 : vector<2x32xf32>
    %51 = vector.extract_strided_slice %38 {offsets = [0, 64], sizes = [2, 32], strides = [1, 1]} : vector<2x128xf32> to vector<2x32xf32>
    %52 = math.tanh %51 : vector<2x32xf32>
    %53 = vector.extract_strided_slice %38 {offsets = [0, 96], sizes = [2, 32], strides = [1, 1]} : vector<2x128xf32> to vector<2x32xf32>
    %54 = arith.negf %53 : vector<2x32xf32>
    %55 = math.exp %54 : vector<2x32xf32>
    %cst_32 = arith.constant 1.000000e+00 : f32
    %56 = vector.broadcast %cst_32 : f32 to vector<2x32xf32>
    %57 = arith.addf %56, %55 : vector<2x32xf32>
    %58 = arith.divf %56, %57 : vector<2x32xf32>
    %59 = arith.mulf %50, %2 : vector<2x32xf32>
    %60 = arith.mulf %44, %52 : vector<2x32xf32>
    %61 = arith.addf %59, %60 : vector<2x32xf32>
    %62 = math.tanh %61 : vector<2x32xf32>
    %63 = arith.mulf %58, %62 : vector<2x32xf32>
    %c0_33 = arith.constant 0 : index
    %c0_34 = arith.constant 0 : index
    %64 = vector.load %arg11[%c0_33, %c0_34] : memref<2x32xf32, #tpu.memory_space<vmem>>, vector<2x32xf32>
    tpu.vector_store %arg11[%c0_33, %c0_34], %63 {strides = array<i32>} : memref<2x32xf32, #tpu.memory_space<vmem>>, vector<2x32xf32>,
    %c0_35 = arith.constant 0 : index
    %c0_36 = arith.constant 0 : index
    %65 = vector.load %arg12[%c0_35, %c0_36] : memref<2x32xf32, #tpu.memory_space<vmem>>, vector<2x32xf32>
    tpu.vector_store %arg12[%c0_35, %c0_36], %61 {strides = array<i32>} : memref<2x32xf32, #tpu.memory_space<vmem>>, vector<2x32xf32>,
    return
  }
}

</mosaic_0001>

<bundles_post_ra>
// kernel: single_attention_forward.1
= control target key start
LH: loop header
LB: loop body
LE: loop exit
PB: predicated region body
PF: predicated region fallthrough
CT: control target
= control target key end

     0   :  { %18 = vsyncpa [#allocation3], 0  ;;  %s1026_s0 = inlined_call_operand.hbm [shape: f32[2,16], index: 0, kind: input, shape index: {}]   ;;  %s1027_s1 = inlined_call_operand.hbm [shape: f32[2,32], index: 1, kind: input, shape index: {}]   ;;  %s1028_s2 = inlined_call_operand.vmem [shape: f32[2,32], index: 2, kind: input, shape index: {}]   ;;  %s1029_s3 = inlined_call_operand.vmem [shape: f32[8,2,32], index: 3, kind: input, shape index: {}]   ;;  %s1030_s4 = inlined_call_operand.vmem [shape: f32[8,2,1], index: 4, kind: input, shape index: {}]   ;;  %s1031_s5 = inlined_call_operand.hbm [shape: f32[32,32], index: 5, kind: input, shape index: {}]   ;;  %s1032_s6 = inlined_call_operand.vmem [shape: f32[1,32], index: 6, kind: input, shape index: {}]   ;;  %s1033_s7 = inlined_call_operand.hbm [shape: f32[16,128], index: 7, kind: input, shape index: {}]   ;;  %s1034_s8 = inlined_call_operand.hbm [shape: f32[32,128], index: 8, kind: input, shape index: {}]   ;;  %s1035_s9 = inlined_call_operand.hbm [shape: f32[32,128], index: 9, kind: input, shape index: {}]   ;;  %s1036_s10 = inlined_call_operand.vmem [shape: f32[1,128], index: 10, kind: input, shape index: {}]   ;;  %s1037_s11 = inlined_call_operand.hbm [shape: f32[2,32], index: 11, kind: output, shape index: {0}]   ;;  %s1038_s12 = inlined_call_operand.hbm [shape: f32[2,32], index: 12, kind: output, shape index: {1}]  }
   0x1   :  { %19 = vsyncpa [#allocation6], 0 }
   0x2   :  { %20 = vsyncpa [#allocation9], 0 }
   0x3   :  { %21 = vsyncpa [#allocation12], 0 }
   0x4   :  { %22 = vsyncpa [#allocation4], 0  ;;  %s40_s23 = sshll.u32 %s1027_s1, 4  ;;  %s41_s23 = int_to_ptr.hbm [resolvable:$true] %s40_s23 }
   0x5   :  { %23 = vsyncpa [#allocation15], 0  ;;  %s788_s24 = smov [#allocation5]   ;;  %s71_s28 = sshll.u32 %s1033_s7, 4  ;;  %s72_s28 = int_to_ptr.hbm [resolvable:$true] %s71_s28 }
   0x6   :  { %s42_s25 = sshll.u32 %s788_s24, 4  ;;  %s789_s29 = smov [#allocation8]   ;;  %s43_s25 = int_to_ptr.vmem [resolvable:$true] %s42_s25 }
   0x7   :  { %45 = dma.hbm_to_vmem [thread:$0]  %s41_s23, 32, %s43_s25, [#allocation6]  }
   0x8   :  { %s73_s30 = sshll.u32 %s789_s29, 4  ;;  %s29_s15 = sshll.u32 %s1026_s0, 4  ;;  %s74_s30 = int_to_ptr.vmem [resolvable:$true] %s73_s30  ;;  %s30_s15 = int_to_ptr.hbm [resolvable:$true] %s29_s15 }
   0x9   :  { %s790_s1 = smov 128   ;;  %s791_s16 = smov 8  }
   0xa   :  { %79 = dma.hbm_to_vmem [thread:$0]  %s72_s28, 256, %s74_s30, [#allocation9], %s790_s1, %s790_s1, %s791_s16  }
   0xb   :  { %s56_s19 = sshll.u32 %s1031_s5, 4  ;;  %s792_s20 = smov [#allocation2]   ;;  %s57_s19 = int_to_ptr.hbm [resolvable:$true] %s56_s19 }
   0xc   :  { %s31_s21 = sshll.u32 %s792_s20, 4  ;;  %s793_s7 = smov [#allocation7]   ;;  %s32_s21 = int_to_ptr.vmem [resolvable:$true] %s31_s21 }
   0xd   :  { %34 = dma.hbm_to_vmem [thread:$0]  %s30_s15, 32, %s32_s21, [#allocation3]  }
   0xe   :  { %s58_s22 = sshll.u32 %s793_s7, 4  ;;  %s84_s0 = sshll.u32 %s1034_s8, 4  ;;  %s59_s22 = int_to_ptr.vmem [resolvable:$true] %s58_s22  ;;  %s85_s0 = int_to_ptr.hbm [resolvable:$true] %s84_s0 }
   0xf   :  { %64 = dma.hbm_to_vmem [thread:$0]  %s57_s19, 512, %s59_s22, [#allocation6], %s790_s1, %s790_s1, %s791_s16  }
  0x10   :  { %s97_s27 = sshll.u32 %s1035_s9, 4  ;;  %s794_s28 = smov [#allocation10]   ;;  %s98_s27 = int_to_ptr.hbm [resolvable:$true] %s97_s27 }
  0x11   :  { %s86_s5 = sshll.u32 %s794_s28, 4  ;;  %s795_s29 = smov [#allocation11]   ;;  %s87_s5 = int_to_ptr.vmem [resolvable:$true] %s86_s5 }
  0x12   :  { %92 = dma.hbm_to_vmem [thread:$0]  %s85_s0, 512, %s87_s5, [#allocation9], %s790_s1, %s790_s1, %s791_s16  }
  0x13   :  { %s99_s30 = sshll.u32 %s795_s29, 4  ;;  %s100_s30 = int_to_ptr.vmem [resolvable:$true] %s99_s30 }
  0x14   :  { %105 = dma.hbm_to_vmem [thread:$0]  %s98_s27, 512, %s100_s30, [#allocation12], %s790_s1, %s790_s1, %s791_s16  }
  0x15   :  { %776 = dma.done.wait [#allocation3], 32  }
  0x16   :  { %777 = vsyncadd [#allocation3], 4294967264 }
  0x17   :  { %778 = dma.done.wait [#allocation6], 544  }
  0x18   :  { %779 = vsyncadd [#allocation6], 4294966752 }
  0x19   :  { %780 = dma.done.wait [#allocation9], 768  }
  0x1a   :  { %781 = vsyncadd [#allocation9], 4294966528 }
  0x1b   :  { %782 = dma.done.wait [#allocation12], 512  }
  0x1c   :  { %783 = vsyncadd [#allocation12], 4294966784  ;;  %v146_v0 = vld [vmem:[#allocation7 + $0x18] sm:$0xff]  ;;  %v145_v1 = vld [vmem:[#allocation7 + $0x10] sm:$0xff]  ;;  %vm151_vm0 = vcmask 261120   ;;  %vm183_vm1 = vcmask 254976  }
  0x1d   :  { %167 = vmatpush.msra.mxu0 %v146_v0  ;;  %v144_v2 = vld [vmem:[#allocation7 + $0x8] sm:$0xff]  ;;  %v143_v3 = vld [vmem:[#allocation7] sm:$0xff]  ;;  %v885_v4 = vld [vmem:[#allocation5] sm:$0x3]  ;;  %v796_v35 = vmov 0   ;;  %vm224_vm2 = vcmask 1024  }
  0x1e   :  { %v556_v5 = vld [vmem:[%s1032_s6] ss:$0 sm:$0xff]  ;;  %v895_v7 = vld [vmem:[%s1029_s3 + $0x8] sm:$0x3]  ;;  %v900_v8 = vld [vmem:[%s1029_s3 + $0x4] sm:$0x3]  ;;  %555 = vset.pattern.permute.xlu1 %v796_v35  ;;  %554 = vset.pattern.permute.xlu0 %v796_v35 }
  0x1f   :  { %168 = vmatpush.msra.mxu0 %v145_v1  ;;  %v905_v9 = vld [vmem:[%s1029_s3] sm:$0x3]  ;;  %v916_v17 = vld [vmem:[%s1029_s3 + $0xa] sm:$0x3]  ;;  %v921_v18 = vld [vmem:[%s1029_s3 + $0x6] sm:$0x3]  ;;  %553 = vset.pattern.permute.xlu2 %v796_v35 }
  0x20   :  { %v926_v19 = vld [vmem:[%s1029_s3 + $0x2] sm:$0x3]  ;;  %v937_v26 = vld [vmem:[%s1029_s3 + $0xe] sm:$0x3]  ;;  %v942_v27 = vld [vmem:[%s1029_s3 + $0xc] sm:$0x3] }
  0x21   :  { %169 = vmatpush.msra.mxu0 %v144_v2  ;;  %v213_v37 = vld [vmem:[%s1030_s4 + $0xa] sm:$0x3]  ;;  %v209_v39 = vld [vmem:[%s1030_s4 + $0x2] sm:$0x3]  ;;  %v212_v41 = vld [vmem:[%s1030_s4 + $0x8] sm:$0x3] }
  0x22   :  { %v208_v42 = vld [vmem:[%s1030_s4] sm:$0x3]  ;;  %v211_v44 = vld [vmem:[%s1030_s4 + $0x6] sm:$0x3]  ;;  %v210_v46 = vld [vmem:[%s1030_s4 + $0x4] sm:$0x3] }
  0x23   :  { %170 = vmatpush.msra.mxu0 %v143_v3  ;;  %v215_v49 = vld [vmem:[%s1030_s4 + $0xe] sm:$0x3]  ;;  %v214_v51 = vld [vmem:[%s1030_s4 + $0xc] sm:$0x3]  ;;  %vm393_vm7 = vcmask 130048   ;;  %s797_s18 = smov 32  }
  0x24   :  { %534 = vmatmul.msk.f32.vlgmr.msra.gmra.mxu0 %vm151_vm0, %v885_v4  ;;  %s798_s20 = smov 64   ;;  %s800_s21 = smov [#allocation14]  }
  0x25   :  { %s514_s7 = sshll.u32 %s800_s21, 4  ;;  %s516_s24 = sshll.u32 %s1038_s12, 4  ;;  %s515_s7 = int_to_ptr.vmem [resolvable:$true] %s514_s7  ;;  %s517_s24 = int_to_ptr.hbm [resolvable:$true] %s516_s24 }
  0x26   :  { %s801_s0 = smov [#allocation13]   ;;  %s505_s27 = sshll.u32 %s1037_s11, 4  ;;  %s506_s27 = int_to_ptr.hbm [resolvable:$true] %s505_s27 }
  0x27   :  { %s503_s3 = sshll.u32 %s801_s0, 4  ;;  %s504_s3 = int_to_ptr.vmem [resolvable:$true] %s503_s3 }
  0xa1   :  { %v172_v6 = vpop.f32.mrf.mxu0 }
  0xa2   :  { %v173_v10 = vadd.f32 %v556_v5, %v172_v6 }
  0xa4   :  { %v179_v11 = vmul.f32 %v173_v10, %v895_v7  ;;  %v177_v12 = vmul.f32 %v173_v10, %v900_v8  ;;  %v175_v13 = vmul.f32 %v173_v10, %v905_v9  ;;  %v180_v20 = vmul.f32 %v173_v10, %v916_v17 }
  0xa5   :  { %v178_v21 = vmul.f32 %v173_v10, %v921_v18  ;;  %v176_v22 = vmul.f32 %v173_v10, %v926_v19  ;;  %v182_v28 = vmul.f32 %v173_v10, %v937_v26  ;;  %v181_v29 = vmul.f32 %v173_v10, %v942_v27 }
  0xa6   :  { %v196_v14 = vsel %vm183_vm1, %v179_v11, 0.0  ;;  %v190_v15 = vsel %vm183_vm1, %v177_v12, 0.0  ;;  %v184_v16 = vsel %vm183_vm1, %v175_v13, 0.0  ;;  %v199_v23 = vsel %vm183_vm1, %v180_v20, 0.0 }
  0xa7   :  { %197 = vadd.xlane.f32.xlu2 %v196_v14  ;;  %191 = vadd.xlane.f32.xlu1 %v190_v15  ;;  %v193_v24 = vsel %vm183_vm1, %v178_v21, 0.0  ;;  %v187_v25 = vsel %vm183_vm1, %v176_v22, 0.0  ;;  %v205_v30 = vsel %vm183_vm1, %v182_v28, 0.0  ;;  %v202_v31 = vsel %vm183_vm1, %v181_v29, 0.0 }
  0xa8   :  { %185 = vadd.xlane.f32.xlu0 %v184_v16 }
  0xaf   :  { %200 = vadd.xlane.f32.xlu2 %v199_v23  ;;  %194 = vadd.xlane.f32.xlu1 %v193_v24 }
  0xb0   :  { %188 = vadd.xlane.f32.xlu0 %v187_v25 }
  0xb7   :  { %206 = vadd.xlane.f32.xlu1 %v205_v30 }
  0xb8   :  { %203 = vadd.xlane.f32.xlu0 %v202_v31 }
 0x11a   :  { %v198_v32 = vpop.xlane.xlu2 %197  ;;  %v192_v33 = vpop.xlane.xlu1 %191 }
 0x11b   :  { %v186_v34 = vpop.xlane.xlu0 %185  ;;  %v220_v47 = vadd.f32 %v212_v41, %v198_v32  ;;  %v218_v52 = vadd.f32 %v210_v46, %v192_v33 }
 0x11c   :  { %v216_v48 = vadd.f32 %v208_v42, %v186_v34 }
 0x11d   :  { %v229_v58 = vsel %vm224_vm2, %v220_v47, -inf  ;;  %v227_v0 = vsel %vm224_vm2, %v218_v52, -inf }
 0x11e   :  { %v225_v59 = vsel %vm224_vm2, %v216_v48, -inf }
 0x11f   :  { %v230_v3 = vmax.f32 %v225_v59, %v229_v58 }
 0x122   :  { %v195_v36 = vpop.xlane.xlu1 %194  ;;  %v201_v38 = vpop.xlane.xlu2 %200 }
 0x123   :  { %v189_v40 = vpop.xlane.xlu0 %188  ;;  %v221_v43 = vadd.f32 %v213_v37, %v201_v38  ;;  %v219_v50 = vadd.f32 %v211_v44, %v195_v36 }
 0x124   :  { %v217_v45 = vadd.f32 %v209_v39, %v189_v40 }
 0x125   :  { %v231_v53 = vsel %vm224_vm2, %v221_v43, -inf  ;;  %v228_v61 = vsel %vm224_vm2, %v219_v50, -inf }
 0x126   :  { %v226_v54 = vsel %vm224_vm2, %v217_v45, -inf }
 0x127   :  { %v232_v62 = vmax.f32 %v226_v54, %v231_v53 }
 0x129   :  { %v237_v6 = vmax.f32 %v230_v3, %v232_v62 }
 0x12a   :  { %v207_v55 = vpop.xlane.xlu1 %206 }
 0x12b   :  { %v223_v56 = vadd.f32 %v215_v49, %v207_v55  ;;  %v204_v57 = vpop.xlane.xlu0 %203 }
 0x12c   :  { %v222_v60 = vadd.f32 %v214_v51, %v204_v57 }
 0x12d   :  { %v235_v63 = vsel %vm224_vm2, %v223_v56, -inf }
 0x12e   :  { %v236_v1 = vmax.f32 %v228_v61, %v235_v63  ;;  %v233_v2 = vsel %vm224_vm2, %v222_v60, -inf }
 0x12f   :  { %v234_v5 = vmax.f32 %v227_v0, %v233_v2 }
 0x131   :  { %v238_v10 = vmax.f32 %v234_v5, %v236_v1 }
 0x133   :  { %v239_v11 = vmax.f32 %v237_v6, %v238_v10 }
 0x135   :  { %v240_v12 = vsub.f32 %v216_v48, %v239_v11  ;;  %v241_v13 = vsub.f32 %v217_v45, %v239_v11  ;;  %v242_v14 = vsub.f32 %v218_v52, %v239_v11  ;;  %v243_v15 = vsub.f32 %v219_v50, %v239_v11 }
 0x136   :  { %v244_v16 = vsub.f32 %v220_v47, %v239_v11  ;;  %v245_v23 = vsub.f32 %v221_v43, %v239_v11  ;;  %v246_v25 = vsub.f32 %v222_v60, %v239_v11  ;;  %v247_v29 = vsub.f32 %v223_v56, %v239_v11 }
 0x137   :  { %v248_v20 = vmul.f32 1.442695, %v240_v12  ;;  %v250_v21 = vmul.f32 1.442695, %v241_v13  ;;  %v252_v22 = vmul.f32 1.442695, %v242_v14 }
 0x138   :  { %v254_v24 = vmul.f32 1.442695, %v243_v15  ;;  %v256_v28 = vmul.f32 1.442695, %v244_v16  ;;  %v258_v30 = vmul.f32 1.442695, %v245_v23 }
 0x139   :  { %558 = vpow2.f32 %v248_v20  ;;  %v260_v31 = vmul.f32 1.442695, %v246_v25  ;;  %v262_v34 = vmul.f32 1.442695, %v247_v29  ;;  %v420_v15 = vld [vmem:[#allocation11 + $0x18] sm:$0xff]  ;;  %v419_v20 = vld [vmem:[#allocation11 + $0x10] sm:$0xff] }
 0x13a   :  { %560 = vpow2.f32 %v250_v21  ;;  %v365_v16 = vld [vmem:[#allocation8 + $0x8] sm:$0xff]  ;;  %433 = vmatpush.msra.mxu3 %v420_v15  ;;  %v418_v23 = vld [vmem:[#allocation11 + $0x8] sm:$0xff]  ;;  %v368_v25 = vld [vmem:[#allocation10 + $0x10] sm:$0xff] }
 0x13b   :  { %562 = vpow2.f32 %v252_v22  ;;  %411 = vmatpush.msra.mxu2 %v365_v16  ;;  %v369_v21 = vld [vmem:[#allocation10 + $0x18] sm:$0xff]  ;;  %v364_v22 = vld [vmem:[#allocation8] sm:$0xff] }
 0x13c   :  { %564 = vpow2.f32 %v254_v24  ;;  %385 = vmatpush.msra.mxu1 %v369_v21  ;;  %434 = vmatpush.msra.mxu3 %v419_v20  ;;  %v132_v24 = vld [vmem:[#allocation2] sm:$0x3] }
 0x13d   :  { %566 = vpow2.f32 %v256_v28  ;;  %412 = vmatpush.msra.mxu2 %v364_v22  ;;  %v417_v28 = vld [vmem:[#allocation11] sm:$0xff] }
 0x13e   :  { %568 = vpow2.f32 %v258_v30  ;;  %435 = vmatpush.msra.mxu3 %v418_v23  ;;  %536 = vmatmul.msk.f32.vlgmr.msra.gmra.mxu2 %vm393_vm7, %v132_v24  ;;  %v367_v30 = vld [vmem:[#allocation10 + $0x8] sm:$0xff] }
 0x13f   :  { %v559_v32 = vpop.eup %558  ;;  %570 = vpow2.f32 %v260_v31  ;;  %386 = vmatpush.msra.mxu1 %v368_v25  ;;  %v366_v31 = vld [vmem:[#allocation10] sm:$0xff] }
 0x140   :  { %v561_v33 = vpop.eup %560  ;;  %v264_v35 = vsel %vm224_vm2, %v559_v32, 0.0  ;;  %572 = vpow2.f32 %v262_v34  ;;  %436 = vmatpush.msra.mxu3 %v417_v28 }
 0x141   :  { %v563_v36 = vpop.eup %562  ;;  %v265_v37 = vsel %vm224_vm2, %v561_v33, 0.0  ;;  %537 = vmatmul.msk.f32.vlgmr.msra.gmra.mxu3 %vm151_vm0, %v885_v4  ;;  %387 = vmatpush.msra.mxu1 %v367_v30 }
 0x142   :  { %v565_v38 = vpop.eup %564  ;;  %v266_v39 = vadd.f32 %v265_v37, %v264_v35  ;;  %v267_v40 = vsel %vm224_vm2, %v563_v36, 0.0 }
 0x143   :  { %v567_v41 = vpop.eup %566  ;;  %v269_v43 = vsel %vm224_vm2, %v565_v38, 0.0  ;;  %388 = vmatpush.msra.mxu1 %v366_v31 }
 0x144   :  { %v268_v42 = vadd.f32 %v267_v40, %v266_v39  ;;  %v569_v44 = vpop.eup %568  ;;  %v271_v46 = vsel %vm224_vm2, %v567_v41, 0.0 }
 0x145   :  { %v571_v47 = vpop.eup %570  ;;  %v273_v49 = vsel %vm224_vm2, %v569_v44, 0.0 }
 0x146   :  { %v270_v45 = vadd.f32 %v269_v43, %v268_v42  ;;  %v573_v50 = vpop.eup %572  ;;  %v275_v52 = vsel %vm224_vm2, %v571_v47, 0.0 }
 0x147   :  { %v277_v54 = vsel %vm224_vm2, %v573_v50, 0.0 }
 0x148   :  { %v272_v48 = vadd.f32 %v271_v46, %v270_v45 }
 0x14a   :  { %v274_v51 = vadd.f32 %v273_v49, %v272_v48 }
 0x14c   :  { %v276_v53 = vadd.f32 %v275_v52, %v274_v51 }
 0x14e   :  { %v278_v55 = vadd.f32 %v277_v54, %v276_v53 }
 0x150   :  { %574 = vrcp.f32 %v278_v55  ;;  %v290_v59 = vand.u32 2147483648, %v278_v55  ;;  %v288_v61 = vand.u32 2147483647, %v278_v55  ;;  %vm284_vm4 = vweird.f32 %v278_v55 }
 0x152   :  { %v291_v63 = vor.u32 1.1754944e-38, %v290_v59  ;;  %vm289_vm6 = vcmp.eq.f32.partialorder %v288_v61, 8.507059e+37 }
 0x156   :  { %v575_v56 = vpop.eup %574 }
 0x157   :  { %v280_v57 = vmul.f32 %v575_v56, %v278_v55  ;;  %vm285_vm3 = vweird.f32 %v575_v56 }
 0x158   :  { %vm286_vm5 = vmor %vm284_vm4, %vm285_vm3 }
 0x159   :  { %v281_v58 = vsub.f32 1.0, %v280_v57 }
 0x15b   :  { %v282_v60 = vmul.f32 %v575_v56, %v281_v58 }
 0x15d   :  { %v283_v62 = vadd.f32 %v575_v56, %v282_v60 }
 0x15f   :  { %v287_v0 = vsel %vm286_vm5, %v575_v56, %v283_v62 }
 0x160   :  { %v292_v1 = vsel %vm289_vm6, %v291_v63, %v287_v0 }
 0x161   :  { %v295_v2 = vmul.f32 %v563_v36, %v292_v1  ;;  %v294_v3 = vmul.f32 %v561_v33, %v292_v1  ;;  %v293_v5 = vmul.f32 %v559_v32, %v292_v1  ;;  %v298_v6 = vmul.f32 %v569_v44, %v292_v1  ;;  %v134_v32 = vld [vmem:[%s1028_s2] sm:$0x3] }
 0x162   :  { %v296_v10 = vmul.f32 %v565_v38, %v292_v1  ;;  %v300_v11 = vmul.f32 %v573_v50, %v292_v1  ;;  %v297_v12 = vmul.f32 %v567_v41, %v292_v1  ;;  %v299_v13 = vmul.f32 %v571_v47, %v292_v1 }
 0x163   :  { %313 = vperm.xlu1 %555, %v295_v2   ;;  %308 = vperm.xlu0 %554, %v294_v3  }
 0x164   :  { %303 = vperm.xlu2 %553, %v293_v5  }
 0x16b   :  { %328 = vperm.xlu1 %555, %v298_v6  }
 0x16c   :  { %318 = vperm.xlu2 %553, %v296_v10  }
 0x173   :  { %338 = vperm.xlu1 %555, %v300_v11  }
 0x174   :  { %323 = vperm.xlu2 %553, %v297_v12  }
 0x17c   :  { %333 = vperm.xlu2 %553, %v299_v13  }
 0x184   :  { %468 = vrot.lane.b32.xlu2 %v134_v32, %s797_s18 }
 0x1be   :  { %v304_v14 = vpop.permute.xlu2 %303 }
 0x1bf   :  { %v341_v33 = vmul.f32 %v304_v14, %v905_v9 }
 0x1c1   :  { %v349_v39 = vsel %vm183_vm1, %v341_v33, 0.0  ;;  %v414_v56 = vpop.f32.mrf.mxu2 }
 0x1c4   :  { %v438_v57 = vpop.f32.mrf.mxu3 }
 0x1c6   :  { %v319_v29 = vpop.permute.xlu2 %318 }
 0x1c7   :  { %v344_v40 = vmul.f32 %v319_v29, %v921_v18 }
 0x1c9   :  { %v354_v9 = vsel %vm183_vm1, %v344_v40, 0.0 }
 0x1ce   :  { %v324_v34 = vpop.permute.xlu2 %323 }
 0x1cf   :  { %v345_v42 = vmul.f32 %v324_v34, %v895_v7 }
 0x1d5   :  { %v314_v35 = vpop.permute.xlu1 %313  ;;  %v309_v36 = vpop.permute.xlu0 %308 }
 0x1d6   :  { %v343_v37 = vmul.f32 %v314_v35, %v900_v8  ;;  %v342_v38 = vmul.f32 %v309_v36, %v926_v19  ;;  %v356_v8 = vsel %vm183_vm1, %v345_v42, 0.0  ;;  %v334_v47 = vpop.permute.xlu2 %333 }
 0x1d7   :  { %v347_v49 = vmul.f32 %v334_v47, %v942_v27  ;;  %v557_v27 = vld [vmem:[%s1036_s10] ss:$0 sm:$0xff]  ;;  %s799_s10 = smov 96  }
 0x1d8   :  { %v350_v4 = vsel %vm183_vm1, %v342_v38, 0.0  ;;  %v352_v43 = vsel %vm183_vm1, %v343_v37, 0.0 }
 0x1d9   :  { %v351_v41 = vadd.f32 %v350_v4, %v349_v39  ;;  %v360_v7 = vsel %vm183_vm1, %v347_v49, 0.0 }
 0x1db   :  { %v353_v44 = vadd.f32 %v352_v43, %v351_v41 }
 0x1dd   :  { %v329_v45 = vpop.permute.xlu1 %328  ;;  %v355_v46 = vadd.f32 %v354_v9, %v353_v44 }
 0x1de   :  { %v346_v19 = vmul.f32 %v329_v45, %v916_v17  ;;  %v469_v16 = vpop.permute.xlu2 %468 }
 0x1df   :  { %v357_v48 = vadd.f32 %v356_v8, %v355_v46 }
 0x1e0   :  { %v358_v18 = vsel %vm183_vm1, %v346_v19, 0.0 }
 0x1e1   :  { %v359_v50 = vadd.f32 %v358_v18, %v357_v48 }
 0x1e3   :  { %v361_v53 = vadd.f32 %v360_v7, %v359_v50 }
 0x1e5   :  { %v339_v51 = vpop.permute.xlu1 %338 }
 0x1e6   :  { %v348_v52 = vmul.f32 %v339_v51, %v937_v26 }
 0x1e8   :  { %v362_v54 = vsel %vm183_vm1, %v348_v52, 0.0 }
 0x1e9   :  { %v363_v55 = vadd.f32 %v362_v54, %v361_v53 }
 0x1eb   :  { %535 = vmatmul.msk.f32.vlgmr.msra.gmra.mxu1 %vm151_vm0, %v363_v55 }
 0x268   :  { %v390_v17 = vpop.f32.mrf.mxu1 }
 0x269   :  { %v415_v58 = vadd.f32 %v414_v56, %v390_v17 }
 0x26b   :  { %v441_v59 = vadd.f32 %v438_v57, %v415_v58 }
 0x26d   :  { %v446_v60 = vadd.f32 %v557_v27, %v441_v59 }
 0x26f   :  { %576 = vtanh.f32 %v446_v60  ;;  %v538_v26 = vmul.f32 -1.442695, %v446_v60 }
 0x271   :  { %578 = vpow2.f32 %v538_v26 }
 0x275   :  { %v577_v61 = vpop.eup %576 }
 0x276   :  { %473 = vrot.lane.b32.xlu0 %v577_v61, %s798_s20 }
 0x277   :  { %v579_v62 = vpop.eup %578 }
 0x278   :  { %v450_v63 = vadd.f32 1.0, %v579_v62 }
 0x27a   :  { %580 = vrcp.f32 %v450_v63  ;;  %v462_v6 = vand.u32 2147483648, %v450_v63  ;;  %vm456_vm9 = vweird.f32 %v450_v63  ;;  %v460_v10 = vand.u32 2147483647, %v450_v63 }
 0x27c   :  { %v463_v12 = vor.u32 1.1754944e-38, %v462_v6  ;;  %vm461_vm11 = vcmp.eq.f32.partialorder %v460_v10, 8.507059e+37 }
 0x280   :  { %v581_v0 = vpop.eup %580 }
 0x281   :  { %v452_v1 = vmul.f32 %v581_v0, %v450_v63  ;;  %vm457_vm8 = vweird.f32 %v581_v0 }
 0x282   :  { %vm458_vm10 = vmor %vm456_vm9, %vm457_vm8 }
 0x283   :  { %v453_v2 = vsub.f32 1.0, %v452_v1 }
 0x285   :  { %v454_v3 = vmul.f32 %v581_v0, %v453_v2 }
 0x287   :  { %v455_v5 = vadd.f32 %v581_v0, %v454_v3 }
 0x289   :  { %v459_v11 = vsel %vm458_vm10, %v581_v0, %v455_v5 }
 0x28a   :  { %v464_v13 = vsel %vm461_vm11, %v463_v12, %v459_v11 }
 0x28b   :  { %v471_v20 = vmul.f32 %v469_v16, %v464_v13 }
 0x2e8   :  { %v474_v14 = vpop.permute.xlu0 %473 }
 0x2e9   :  { %v476_v15 = vmul.f32 %v474_v14, %v464_v13 }
 0x2eb   :  { %478 = vrot.lane.b32.xlu1 %v476_v15, %s797_s18 }
 0x35d   :  { %v479_v21 = vpop.permute.xlu1 %478 }
 0x35e   :  { %v481_v22 = vadd.f32 %v479_v21, %v471_v20 }
 0x360   :  { %582 = vtanh.f32 %v481_v22  ;;  %494 = vrot.lane.b32.xlu1 %v481_v22, %s799_s10 }
 0x366   :  { %v583_v23 = vpop.eup %582 }
 0x367   :  { %484 = vrot.lane.b32.xlu0 %v583_v23, %s798_s20 }
 0x3d2   :  { %v495_v24 = vpop.permute.xlu1 %494 }
 0x3d3   :  { %497 = vst.msk [vmem:[#allocation14] sm:$0x3] %vm183_vm1, %v495_v24 }
 0x3d4   :  { %519 = dma.vmem_to_hbm [thread:$0]  %s515_s7, 32, %s517_s24, [#allocation15]  }
 0x3d9   :  { %v485_v25 = vpop.permute.xlu0 %484 }
 0x3da   :  { %v487_v28 = vmul.f32 %v485_v25, %v464_v13 }
 0x3dc   :  { %489 = vrot.lane.b32.xlu2 %v487_v28, %s797_s18 }
 0x436   :  { %v490_v29 = vpop.permute.xlu2 %489 }
 0x437   :  { %492 = vst.msk [vmem:[#allocation13] sm:$0x3] %vm183_vm1, %v490_v29 }
 0x438   :  { %508 = dma.vmem_to_hbm [thread:$0]  %s504_s3, 32, %s506_s27, [#allocation4]  }
 0x439   :  { %784 = dma.done.wait [#allocation4], 32  }
 0x43a   :  { %785 = vsyncadd [#allocation4], 4294967264 }
 0x43b   :  { %786 = dma.done.wait [#allocation15], 32  }
 0x43c   :  { %787 = vsyncadd [#allocation15], 4294967264 }
 0x43d   :  { %528 = vsyncpa [#allocation3], 1 }
 0x43e   :  { %529 = vsyncpa [#allocation6], 1 }
 0x43f   :  { %530 = vsyncpa [#allocation9], 1 }
 0x440   :  { %531 = vsyncpa [#allocation12], 1 }
 0x441   :  { %532 = vsyncpa [#allocation4], 1 }
 0x442   :  { %533 = vsyncpa [#allocation15], 1 }

</bundles_post_ra>
